<compile_context>
chip_gen: v7x
topology: tpu7x:2x2x1
jax: 0.10.0
libtpu: 0.0.40
codegen_flags: <defaults>
</compile_context>

<pallas_src>
import functools
import math

import jax
import jax.numpy as jnp
from jax.experimental import pallas as pl
from jax.experimental.pallas import tpu as pltpu


def _sin_emb_kernel_bcast(pos_ref, invdiv_ref, phase_ref, out_ref):
    # pos_ref: (tm, 1) f32, invdiv/phase: (1, width) f32, out_ref: (tm, width)
    angle = pos_ref[...] * invdiv_ref[...] + phase_ref[...]
    out_ref[...] = jnp.sin(angle).astype(out_ref.dtype)


def _sin_emb_kernel_packed(pos_ref, expand_ref, invdiv_ref, phase_ref, out_ref):
    # pos_ref:    (tm, kp)     f32  — k packed rows per output row (lanes >= k zero-padded)
    # expand_ref: (kp, width)  bf16 — 0/1 block "broadcast" matrix (exact in bf16)
    # invdiv_ref: (1, width)   f32
    # phase_ref:  (1, width)   f32  — 0 on even feature lanes, pi/2 on odd lanes
    # out_ref:    (tm, width)
    p = pos_ref[...]
    e = expand_ref[...]
    # Exact 3-way bf16 split of the f32 positions: each DEFAULT-precision bf16
    # MXU pass is exact because the expand matrix is 0/1, and hi+mid+lo
    # reconstructs the f32 position to ~1 ulp.  3 passes instead of 6 (HIGHEST).
    p_hi = p.astype(jnp.bfloat16)
    r1 = p - p_hi.astype(jnp.float32)
    p_mid = r1.astype(jnp.bfloat16)
    p_lo = (r1 - p_mid.astype(jnp.float32)).astype(jnp.bfloat16)
    pos_exp = (jnp.dot(p_hi, e, preferred_element_type=jnp.float32)
               + jnp.dot(p_mid, e, preferred_element_type=jnp.float32)
               + jnp.dot(p_lo, e, preferred_element_type=jnp.float32))
    angle = pos_exp * invdiv_ref[...] + phase_ref[...]
    out_ref[...] = jnp.sin(angle).astype(out_ref.dtype)


@functools.partial(jax.jit, static_argnames=("dim", "theta", "out_dtype"))
def sinusoidal_embedding(pos, dim, theta=10000.0, out_dtype=jnp.float32):
    """pos: [B, N] -> [B, N, dim] sinusoidal embedding (even lanes sin, odd cos)."""
    assert dim % 2 == 0, "dim must be divisible by 2"
    B, N = pos.shape
    M = B * N
    out_itemsize = jnp.dtype(out_dtype).itemsize
    f32b = 4

    # ---- lane packing factor: k original rows per (k*dim)-lane output row ----
    lcm = math.lcm(dim, 128)
    k = lcm // dim if lcm <= 512 else 1
    width = k * dim
    kp = ((k + 7) // 8) * 8 if k > 1 else 1     # matmul K padded to a sublane multiple

    # ---- constants (module's `div` buffer inverted / phase-shifted / lane-tiled) ----
    j = jnp.arange(dim // 2, dtype=jnp.float32)
    inv_div = 1.0 / jnp.power(jnp.float32(theta), 2.0 * j / jnp.float32(dim))
    inv_div_row = jnp.repeat(inv_div, 2)                               # lane d -> 1/div[d//2]
    phase_row = jnp.tile(jnp.array([0.0, jnp.pi / 2.0], jnp.float32), dim // 2)
    inv_div_full = jnp.tile(inv_div_row, k).reshape(1, width)
    phase_full = jnp.tile(phase_row, k).reshape(1, width)

    # ---- row tile (packed rows) from an honest VMEM budget; safe for v7x 64 MiB/TC ----
    per_row = (2 * width * out_itemsize      # double-buffered output tile
               + 2 * 128 * f32b              # double-buffered pos tile (lane-padded to 128)
               + 5 * width * f32b)           # in-kernel f32 temporaries (dots, sums, angle)
    budget = 40 * 1024 * 1024
    tm = budget // per_row
    tm = min(tm, max(1, (4 * 1024 * 1024) // (width * out_itemsize)))  # ~4 MiB output tile
    tm = max(16, (tm // 16) * 16)            # %16 keeps bf16 (16,128) output tiles native

    M_pack = pl.cdiv(M, k)                   # packed row count (no pad-to-tile!)
    if M_pack <= tm:
        if M_pack >= 16:
            # Keep >=2 grid steps so both TensorCores get work on v7x.
            tm = ((pl.cdiv(M_pack, 2) + 7) // 8) * 8
        else:
            tm = M_pack                      # tiny input: one full-extent block
    grid = (pl.cdiv(M_pack, tm),)

    # ---- inputs: pad only to a multiple of k; boundary blocks are clipped by Pallas ----
    pos_flat = pos.reshape(M).astype(jnp.float32)
    if M_pack * k != M:
        pos_flat = jnp.pad(pos_flat, (0, M_pack * k - M))
    pos_packed = pos_flat.reshape(M_pack, k)
    if kp != k:
        pos_packed = jnp.pad(pos_packed, ((0, 0), (0, kp - k)))

    footprint = tm * per_row + 64 * width * f32b + (4 * 1024 * 1024)   # + consts + slack
    cparams = pltpu.CompilerParams(
        dimension_semantics=("parallel",),
        vmem_limit_bytes=int(min(48 * 1024 * 1024, max(footprint, 8 * 1024 * 1024))))
    cost = pl.CostEstimate(flops=2 * M * dim,
                           transcendentals=M * dim,
                           bytes_accessed=M * 4 + M * dim * out_itemsize)

    if k == 1:
        out = pl.pallas_call(
            _sin_emb_kernel_bcast,
            out_shape=jax.ShapeDtypeStruct((M_pack, width), out_dtype),
            grid_spec=pltpu.PrefetchScalarGridSpec(
                num_scalar_prefetch=0,
                grid=grid,
                in_specs=[
                    pl.BlockSpec((tm, 1), lambda i: (i, 0)),
                    pl.BlockSpec((1, width), lambda i: (0, 0)),
                    pl.BlockSpec((1, width), lambda i: (0, 0)),
                ],
                out_specs=pl.BlockSpec((tm, width), lambda i: (i, 0)),
            ),
            compiler_params=cparams,
            cost_estimate=cost,
        )(pos_packed, inv_div_full, phase_full)
    else:
        # 0/1 expansion matrix: expand[g, g*dim + d] = 1 (rows >= k are zero padding).
        lane_group = jnp.arange(width, dtype=jnp.int32) // dim
        expand = (jnp.arange(kp, dtype=jnp.int32)[:, None]
                  == lane_group[None, :]).astype(jnp.bfloat16)          # (kp, width)
        out = pl.pallas_call(
            _sin_emb_kernel_packed,
            out_shape=jax.ShapeDtypeStruct((M_pack, width), out_dtype),
            grid_spec=pltpu.PrefetchScalarGridSpec(
                num_scalar_prefetch=0,
                grid=grid,
                in_specs=[
                    pl.BlockSpec((tm, kp), lambda i: (i, 0)),
                    pl.BlockSpec((kp, width), lambda i: (0, 0)),
                    pl.BlockSpec((1, width), lambda i: (0, 0)),
                    pl.BlockSpec((1, width), lambda i: (0, 0)),
                ],
                out_specs=pl.BlockSpec((tm, width), lambda i: (i, 0)),
            ),
            compiler_params=cparams,
            cost_estimate=cost,
        )(pos_packed, expand, inv_div_full, phase_full)

    out = out.reshape(M_pack * k, dim)       # free row-major reshape
    if M_pack * k != M:                      # extra output pass only when k does not divide M
        out = out[:M]
    return out.reshape(B, N, dim)


def _reference(pos, dim, theta=10000.0):
    j = jnp.arange(dim // 2, dtype=jnp.float32)
    div = jnp.power(jnp.float32(theta), 2.0 * j / jnp.float32(dim))
    p = pos.astype(jnp.float32)[..., None]                 # (B, N, 1)
    sin = jnp.sin(p / div)
    cos = jnp.cos(p / div)
    B, N = pos.shape
    return jnp.stack([sin, cos], axis=-1).reshape(B, N, dim)


if __name__ == "__main__":
    key = jax.random.PRNGKey(0)
    k1, k2, k3 = jax.random.split(key, 3)

    # Main case: B=2, N=8, dim=32  (packed path, k = 128/32 = 4 rows per output row)
    B, N, dim = 2, 8, 32
    pos = jax.random.uniform(k1, (B, N), dtype=jnp.float32, minval=0.0, maxval=100.0)
    emb = jax.block_until_ready(sinusoidal_embedding(pos, dim))
    ref = _reference(pos, dim)
    assert emb.shape == (B, N, dim) and emb.dtype == jnp.float32
    # sin(x + pi/2) vs cos(x) + bf16 split reconstruction differ by a few ulp of the angle
    assert jnp.allclose(emb, ref, atol=5e-5, rtol=1e-5)

    # dim >= 128 path (k = 1, plain broadcast kernel, 2 grid steps)
    pos2 = jax.random.uniform(k2, (2, 8), dtype=jnp.float32, minval=0.0, maxval=100.0)
    emb2 = jax.block_until_ready(sinusoidal_embedding(pos2, 128))
    assert jnp.allclose(emb2, _reference(pos2, 128), atol=5e-5, rtol=1e-5)

    # Ragged case (M = 15 not divisible by k = 4): pad-to-k + post slice path
    pos3 = jax.random.uniform(k3, (3, 5), dtype=jnp.float32, minval=0.0, maxval=100.0)
    emb3 = jax.block_until_ready(sinusoidal_embedding(pos3, 32))
    assert jnp.allclose(emb3, _reference(pos3, 32), atol=5e-5, rtol=1e-5)

    print("KERNEL_OK")
</pallas_src>

<mosaic_0001>
module attributes {stable_mosaic.version = 11 : i64} {
  func.func @_sin_emb_kernel_packed(%arg0: i32, %arg1: memref<4x8xf32, #tpu.memory_space<vmem>>, %arg2: memref<8x128xbf16, #tpu.memory_space<vmem>>, %arg3: memref<1x128xf32, #tpu.memory_space<vmem>>, %arg4: memref<1x128xf32, #tpu.memory_space<vmem>>, %arg5: memref<4x128xf32, #tpu.memory_space<vmem>>) attributes {dimension_semantics = [#tpu.dimension_semantics<parallel>], iteration_bounds = array<i64: 1>, scalar_prefetch = 0 : i64, scratch_operands = 0 : i64, tpu.core_type = #tpu.core_type<tc>, window_params = [{transform_indices = @transform_0, window_bounds = array<i64: 4, 8>}, {pipeline_mode = #tpu.pipeline_mode<synchronous>, transform_indices = @transform_1, window_bounds = array<i64: 8, 128>}, {pipeline_mode = #tpu.pipeline_mode<synchronous>, transform_indices = @transform_2, window_bounds = array<i64: 1, 128>}, {pipeline_mode = #tpu.pipeline_mode<synchronous>, transform_indices = @transform_3, window_bounds = array<i64: 1, 128>}, {transform_indices = @transform_4, window_bounds = array<i64: 4, 128>}]} {
    %c0 = arith.constant 0 : index
    %c0_0 = arith.constant 0 : index
    %0 = vector.load %arg1[%c0, %c0_0] : memref<4x8xf32, #tpu.memory_space<vmem>>, vector<4x8xf32>
    %c0_1 = arith.constant 0 : index
    %c0_2 = arith.constant 0 : index
    %1 = vector.load %arg2[%c0_1, %c0_2] : memref<8x128xbf16, #tpu.memory_space<vmem>>, vector<8x128xbf16>
    %2 = arith.truncf %0 : vector<4x8xf32> to vector<4x8xbf16>
    %3 = arith.extf %2 : vector<4x8xbf16> to vector<4x8xf32>
    %4 = arith.subf %0, %3 : vector<4x8xf32>
    %5 = arith.truncf %4 : vector<4x8xf32> to vector<4x8xbf16>
    %6 = arith.extf %5 : vector<4x8xbf16> to vector<4x8xf32>
    %7 = arith.subf %4, %6 : vector<4x8xf32>
    %8 = arith.truncf %7 : vector<4x8xf32> to vector<4x8xbf16>
    %cst = arith.constant dense<0.000000e+00> : vector<4x128xf32>
    %9 = tpu.matmul %2, %1, %cst {dimension_numbers = #tpu.dot_dimension_numbers<[1], [0], [0], [1], [0, 0, 1, 1], [], []>} : vector<4x8xbf16>, vector<8x128xbf16>, vector<4x128xf32> -> vector<4x128xf32>
    %cst_3 = arith.constant dense<0.000000e+00> : vector<4x128xf32>
    %10 = tpu.matmul %5, %1, %cst_3 {dimension_numbers = #tpu.dot_dimension_numbers<[1], [0], [0], [1], [0, 0, 1, 1], [], []>} : vector<4x8xbf16>, vector<8x128xbf16>, vector<4x128xf32> -> vector<4x128xf32>
    %11 = arith.addf %9, %10 : vector<4x128xf32>
    %cst_4 = arith.constant dense<0.000000e+00> : vector<4x128xf32>
    %12 = tpu.matmul %8, %1, %cst_4 {dimension_numbers = #tpu.dot_dimension_numbers<[1], [0], [0], [1], [0, 0, 1, 1], [], []>} : vector<4x8xbf16>, vector<8x128xbf16>, vector<4x128xf32> -> vector<4x128xf32>
    %13 = arith.addf %11, %12 : vector<4x128xf32>
    %c0_5 = arith.constant 0 : index
    %c0_6 = arith.constant 0 : index
    %14 = vector.load %arg3[%c0_5, %c0_6] : memref<1x128xf32, #tpu.memory_space<vmem>>, vector<1x128xf32>
    %15 = vector.broadcast %14 : vector<1x128xf32> to vector<4x128xf32>
    %16 = arith.mulf %13, %15 : vector<4x128xf32>
    %c0_7 = arith.constant 0 : index
    %c0_8 = arith.constant 0 : index
    %17 = vector.load %arg4[%c0_7, %c0_8] : memref<1x128xf32, #tpu.memory_space<vmem>>, vector<1x128xf32>
    %18 = vector.broadcast %17 : vector<1x128xf32> to vector<4x128xf32>
    %19 = arith.addf %16, %18 : vector<4x128xf32>
    %20 = math.sin %19 : vector<4x128xf32>
    %c0_9 = arith.constant 0 : index
    %c0_10 = arith.constant 0 : index
    %21 = vector.load %arg5[%c0_9, %c0_10] : memref<4x128xf32, #tpu.memory_space<vmem>>, vector<4x128xf32>
    tpu.vector_store %arg5[%c0_9, %c0_10], %20 {strides = array<i32>} : memref<4x128xf32, #tpu.memory_space<vmem>>, vector<4x128xf32>,
    return
  }
  func.func @transform_0(%arg0: i32) -> (i32, i32) {
    %c0_i32 = arith.constant 0 : i32
    %c0_i32_0 = arith.constant 0 : i32
    return %arg0, %c0_i32 : i32, i32
  }
  func.func @transform_1(%arg0: i32) -> (i32, i32) {
    %c0_i32 = arith.constant 0 : i32
    %c0_i32_0 = arith.constant 0 : i32
    %c0_i32_1 = arith.constant 0 : i32
    return %c0_i32, %c0_i32_0 : i32, i32
  }
  func.func @transform_2(%arg0: i32) -> (i32, i32) {
    %c0_i32 = arith.constant 0 : i32
    %c0_i32_0 = arith.constant 0 : i32
    %c0_i32_1 = arith.constant 0 : i32
    return %c0_i32, %c0_i32_0 : i32, i32
  }
  func.func @transform_3(%arg0: i32) -> (i32, i32) {
    %c0_i32 = arith.constant 0 : i32
    %c0_i32_0 = arith.constant 0 : i32
    %c0_i32_1 = arith.constant 0 : i32
    return %c0_i32, %c0_i32_0 : i32, i32
  }
  func.func @transform_4(%arg0: i32) -> (i32, i32) {
    %c0_i32 = arith.constant 0 : i32
    %c0_i32_0 = arith.constant 0 : i32
    return %arg0, %c0_i32 : i32, i32
  }
}

</mosaic_0001>

<bundles_post_ra>
// kernel: tile.17
= control target key start
LH: loop header
LB: loop body
LE: loop exit
PB: predicated region body
PF: predicated region fallthrough
CT: control target
= control target key end

     0   :  { %s22_s0 = inlined_call_operand.vmem [shape: f32[32], index: 0, kind: input, shape index: {}]   ;;  %s23_s1 = inlined_call_operand.vmem [shape: f32[4,32], index: 1, kind: output, shape index: {}]  }
   0x1   :  { %v4_v0 = vld [vmem:[%s22_s0] ss:$0 sm:$0xff] }
   0x2   :  { %5 = vst [vmem:[%s23_s1] sm:$0xf] %v4_v0 }

// kernel: tile.16
= control target key start
LH: loop header
LB: loop body
LE: loop exit
PB: predicated region body
PF: predicated region fallthrough
CT: control target
= control target key end

     0   :  { %s131_s10 = smov 30   ;;  %s132_s11 = smov 26   ;;  %vm3_vm0 = vcmask 15360   ;;  %vm9_vm1 = vcmask 261360   ;;  %vm15_vm2 = vcmask 244960   ;;  %vm21_vm3 = vcmask 228560   ;;  %s207_s0 = inlined_call_operand.vmem [shape: f32[16,2], index: 0, kind: input, shape index: {}]   ;;  %s208_s1 = inlined_call_operand.vmem [shape: f32[32], index: 1, kind: output, shape index: {}]  }
   0x1   :  { %v101_v0 = vld [vmem:[%s207_s0 + $0xf] sm:$0x1]   ;;  %v103_v1 = vld [vmem:[%s207_s0 + $0xd] sm:$0x1]   ;;  %v102_v2 = vld [vmem:[%s207_s0 + $0xe] sm:$0x1]  }
   0x2   :  { %7 = vrot.lane.b32.xlu0 %v101_v0, %s131_s10  ;;  %19 = vrot.lane.b32.xlu1 %v103_v1, %s132_s11  ;;  %v104_v3 = vld [vmem:[%s207_s0 + $0xc] sm:$0x1]   ;;  %s133_s16 = smov 28   ;;  %s134_s17 = smov 24   ;;  %v105_v4 = vld [vmem:[%s207_s0 + $0xb] sm:$0x1]  }
   0x3   :  { %v106_v5 = vld [vmem:[%s207_s0 + $0xa] sm:$0x1]   ;;  %v2_v6 = vld [vmem:[%s207_s0] sm:$0x1]   ;;  %s135_s24 = smov 22   ;;  %s136_s25 = smov 20  }
   0x4   :  { %4 = vst.msk [vmem:[#allocation0] sm:$0x1] %vm3_vm0, %v2_v6   ;;  %v107_v7 = vld [vmem:[%s207_s0 + $0x9] sm:$0x1]   ;;  %v108_v8 = vld [vmem:[%s207_s0 + $0x8] sm:$0x1]  }
   0x5   :  { %s137_s30 = smov 18   ;;  %s138_s2 = smov 16   ;;  %v109_v9 = vld [vmem:[%s207_s0 + $0x7] sm:$0x1]   ;;  %v110_v10 = vld [vmem:[%s207_s0 + $0x6] sm:$0x1]  }
   0x6   :  { %13 = vrot.lane.b32.xlu0 %v102_v2, %s133_s16  ;;  %25 = vrot.lane.b32.xlu1 %v104_v3, %s134_s17  ;;  %s139_s7 = smov 14   ;;  %s140_s8 = smov 12   ;;  %v111_v11 = vld [vmem:[%s207_s0 + $0x5] sm:$0x1]   ;;  %v112_v12 = vld [vmem:[%s207_s0 + $0x4] sm:$0x1]  }
   0x7   :  { %s141_s13 = smov 10   ;;  %s142_s14 = smov 8   ;;  %v113_v13 = vld [vmem:[%s207_s0 + $0x3] sm:$0x1]   ;;  %v114_v14 = vld [vmem:[%s207_s0 + $0x2] sm:$0x1]  }
   0x8   :  { %s143_s19 = smov 6   ;;  %s144_s20 = smov 4   ;;  %v115_v15 = vld [vmem:[%s207_s0 + $0x1] sm:$0x1]   ;;  %vm27_vm4 = vcmask 212160   ;;  %vm33_vm5 = vcmask 195760  }
   0x9   :  { %s145_s0 = smov 2   ;;  %vm39_vm6 = vcmask 179360   ;;  %vm45_vm7 = vcmask 162960   ;;  %vm51_vm8 = vcmask 146560   ;;  %vm57_vm9 = vcmask 130160  }
   0xa   :  { %31 = vrot.lane.b32.xlu0 %v105_v4, %s135_s24  ;;  %37 = vrot.lane.b32.xlu1 %v106_v5, %s136_s25  ;;  %vm63_vm10 = vcmask 113760   ;;  %vm69_vm11 = vcmask 97360   ;;  %vm75_vm12 = vcmask 80960   ;;  %vm81_vm13 = vcmask 64560  }
   0xb   :  { %vm87_vm14 = vcmask 48160   ;;  %vm93_vm15 = vcmask 31760  }
   0xe   :  { %43 = vrot.lane.b32.xlu0 %v107_v7, %s137_s30  ;;  %49 = vrot.lane.b32.xlu1 %v108_v8, %s138_s2 }
  0x12   :  { %55 = vrot.lane.b32.xlu0 %v109_v9, %s139_s7  ;;  %61 = vrot.lane.b32.xlu1 %v110_v10, %s140_s8 }
  0x16   :  { %67 = vrot.lane.b32.xlu0 %v111_v11, %s141_s13  ;;  %73 = vrot.lane.b32.xlu1 %v112_v12, %s142_s14 }
  0x1a   :  { %79 = vrot.lane.b32.xlu0 %v113_v13, %s143_s19  ;;  %85 = vrot.lane.b32.xlu1 %v114_v14, %s144_s20 }
  0x1e   :  { %91 = vrot.lane.b32.xlu0 %v115_v15, %s145_s0 }
  0x74   :  { %v8_v16 = vpop.permute.xlu0 %7   ;;  %v20_v17 = vpop.permute.xlu1 %19  }
  0x75   :  { %10 = vst.msk [vmem:[#allocation0] sm:$0x1] %vm9_vm1, %v8_v16  }
  0x78   :  { %v14_v18 = vpop.permute.xlu0 %13   ;;  %v26_v19 = vpop.permute.xlu1 %25  }
  0x79   :  { %16 = vst.msk [vmem:[#allocation0] sm:$0x1] %vm15_vm2, %v14_v18  }
  0x7a   :  { %22 = vst.msk [vmem:[#allocation0] sm:$0x1] %vm21_vm3, %v20_v17  }
  0x7b   :  { %28 = vst.msk [vmem:[#allocation0] sm:$0x1] %vm27_vm4, %v26_v19  }
  0x7c   :  { %v32_v20 = vpop.permute.xlu0 %31   ;;  %v38_v21 = vpop.permute.xlu1 %37  }
  0x7d   :  { %34 = vst.msk [vmem:[#allocation0] sm:$0x1] %vm33_vm5, %v32_v20  }
  0x7e   :  { %40 = vst.msk [vmem:[#allocation0] sm:$0x1] %vm39_vm6, %v38_v21  }
  0x80   :  { %v44_v22 = vpop.permute.xlu0 %43   ;;  %v50_v23 = vpop.permute.xlu1 %49  }
  0x81   :  { %46 = vst.msk [vmem:[#allocation0] sm:$0x1] %vm45_vm7, %v44_v22  }
  0x82   :  { %52 = vst.msk [vmem:[#allocation0] sm:$0x1] %vm51_vm8, %v50_v23  }
  0x84   :  { %v56_v24 = vpop.permute.xlu0 %55   ;;  %v62_v25 = vpop.permute.xlu1 %61  }
  0x85   :  { %58 = vst.msk [vmem:[#allocation0] sm:$0x1] %vm57_vm9, %v56_v24  }
  0x86   :  { %64 = vst.msk [vmem:[#allocation0] sm:$0x1] %vm63_vm10, %v62_v25  }
  0x88   :  { %v68_v26 = vpop.permute.xlu0 %67   ;;  %v74_v27 = vpop.permute.xlu1 %73  }
  0x89   :  { %70 = vst.msk [vmem:[#allocation0] sm:$0x1] %vm69_vm11, %v68_v26  }
  0x8a   :  { %76 = vst.msk [vmem:[#allocation0] sm:$0x1] %vm75_vm12, %v74_v27  }
  0x8c   :  { %v80_v28 = vpop.permute.xlu0 %79   ;;  %v86_v29 = vpop.permute.xlu1 %85  }
  0x8d   :  { %82 = vst.msk [vmem:[#allocation0] sm:$0x1] %vm81_vm13, %v80_v28  }
  0x8e   :  { %88 = vst.msk [vmem:[#allocation0] sm:$0x1] %vm87_vm14, %v86_v29  }
  0x90   :  { %v92_v30 = vpop.permute.xlu0 %91  }
  0x91   :  { %94 = vst.msk [vmem:[#allocation0] sm:$0x1] %vm93_vm15, %v92_v30  }
  0x98   :  { %v98_v31 = vld [vmem:[#allocation0] sm:$0x1] }
  0x99   :  { %100 = vst [vmem:[%s208_s1] sm:$0x1] %v98_v31 }

// kernel: tile.14
= control target key start
LH: loop header
LB: loop body
LE: loop exit
PB: predicated region body
PF: predicated region fallthrough
CT: control target
= control target key end

     0   :  { %s28_s0 = inlined_call_operand.vmem [shape: f32[2], index: 0, kind: input, shape index: {}]   ;;  %s29_s1 = inlined_call_operand.vmem [shape: f32[16,2], index: 1, kind: output, shape index: {}]  }
   0x1   :  { %v4_v0 = vld [vmem:[%s28_s0] ss:$0 sm:$0xff] }
   0x2   :  { %5 = vst [vmem:[%s29_s1] sm:$0xff] %v4_v0  ;;  %8 = vst [vmem:[%s29_s1 + $0x8] sm:$0xff] %v4_v0 }

// kernel: tile.18
= control target key start
LH: loop header
LB: loop body
LE: loop exit
PB: predicated region body
PF: predicated region fallthrough
CT: control target
= control target key end

     0   :  { %vm7_vm0 = vcmask 261120   ;;  %s37_s8 = smov 32   ;;  %s38_s9 = smov 64   ;;  %vm13_vm1 = vcmask 1048320   ;;  %vm19_vm2 = vcmask 785920   ;;  %vm25_vm3 = vcmask 523520   ;;  %s55_s0 = inlined_call_operand.vmem [shape: f32[4,32], index: 0, kind: input, shape index: {}]   ;;  %s56_s1 = inlined_call_operand.vmem [shape: f32[1,128], index: 1, kind: output, shape index: {}]  }
   0x1   :  { %v4_v0 = vld [vmem:[%s55_s0] sm:$0xf]  ;;  %s36_s0 = smov 96  }
   0x2   :  { %5 = vst [vmem:[#allocation1] sm:$0xf] %v4_v0 }
   0x9   :  { %v10_v1 = vld [vmem:[#allocation1 + $0x3] sm:$0x1]   ;;  %v22_v2 = vld [vmem:[#allocation1 + $0x1] sm:$0x1]   ;;  %v6_v3 = vld [vmem:[#allocation1] sm:$0x1]  }
   0xa   :  { %11 = vrot.lane.b32.xlu0 %v10_v1, %s36_s0  ;;  %23 = vrot.lane.b32.xlu1 %v22_v2, %s37_s8  ;;  %v16_v4 = vld [vmem:[#allocation1 + $0x2] sm:$0x1]   ;;  %8 = vst.msk [vmem:[#allocation0] sm:$0x1] %vm7_vm0, %v6_v3  }
   0xe   :  { %17 = vrot.lane.b32.xlu0 %v16_v4, %s38_s9 }
  0x7c   :  { %v12_v5 = vpop.permute.xlu0 %11   ;;  %v24_v6 = vpop.permute.xlu1 %23  }
  0x7d   :  { %14 = vst.msk [vmem:[#allocation0] sm:$0x1] %vm13_vm1, %v12_v5  }
  0x80   :  { %v18_v7 = vpop.permute.xlu0 %17  }
  0x81   :  { %20 = vst.msk [vmem:[#allocation0] sm:$0x1] %vm19_vm2, %v18_v7  }
  0x82   :  { %26 = vst.msk [vmem:[#allocation0] sm:$0x1] %vm25_vm3, %v24_v6  }
  0x89   :  { %v30_v8 = vld [vmem:[#allocation0] sm:$0x1] }
  0x8a   :  { %32 = vst [vmem:[%s56_s1] sm:$0x1] %v30_v8 }

// kernel: sinusoidal_embedding.1
= control target key start
LH: loop header
LB: loop body
LE: loop exit
PB: predicated region body
PF: predicated region fallthrough
CT: control target
= control target key end

     0   :  { %vm31_vm0 = vcmask 1043456   ;;  %v341_v0 = vmov 0.0   ;;  %vm342_vm1 = vmmov 0   ;;  %vm27_vm2 = vcmask 64512   ;;  %s410_s1 = inlined_call_operand.vmem [shape: bf16[8,128], index: 1, kind: input, shape index: {}]   ;;  %s411_s0 = inlined_call_operand.vmem [shape: f32[4,8], index: 0, kind: input, shape index: {}]   ;;  %s412_s2 = inlined_call_operand.vmem [shape: f32[1,128], index: 2, kind: input, shape index: {}]   ;;  %s413_s3 = inlined_call_operand.vmem [shape: f32[1,128], index: 3, kind: input, shape index: {}]   ;;  %s414_s4 = inlined_call_operand.vmem [shape: f32[4,128], index: 4, kind: output, shape index: {}]  }
   0x1   :  { %308 = vmatprep.subr.bf16.mxu0 %v341_v0  ;;  %v19_v1 = vld [vmem:[%s410_s1] sm:$0xf]  ;;  %310 = vmatprep.mubr.msk.bf16.mxu0 %vm342_vm1, %v341_v0  ;;  %v343_v34 = vmov 683565275   ;;  %v344_v36 = vmov 2475754826  }
   0x2   :  { %v18_v2 = vld [vmem:[%s411_s0] sm:$0xf]  ;;  %v33_v3 = vsel %vm31_vm0, %v19_v1, 0  ;;  %302 = vmatprep.subr.bf16.mxu1 %v341_v0  ;;  %304 = vmatprep.mubr.msk.bf16.mxu1 %vm342_vm1, %v341_v0  ;;  %v345_v39 = vmov 2131351028  }
   0x3   :  { %v20_v4 = vpack.c.bf16 %v18_v2, %v18_v2  ;;  %309 = vmatpush3.bf16.msra.mxu0 %v33_v3  ;;  %303 = vmatpush3.bf16.msra.mxu1 %v33_v3  ;;  %v290_v16 = vld [vmem:[%s412_s2] ss:$0 sm:$0xff]  ;;  %v346_v42 = vmov 2102212464   ;;  %v347_v45 = vmov 920167782  }
   0x4   :  { %314 = vmatprep.subr.bf16.mxu0 %v341_v0  ;;  %v291_v19 = vld [vmem:[%s413_s3] ss:$0 sm:$0xff]  ;;  %v348_v48 = vmov 1326507024  }
   0x5   :  { %v21_v5 = vunpack.c.l.bf16 %v20_v4 }
   0x6   :  { %311 = vmatmul.mubr.msk.bf16.vlgmr.msra.gmra.mrb[0].mxu0 %vm27_vm2, %v20_v4 }
   0x7   :  { %v22_v6 = vsub.f32 %v18_v2, %v21_v5  ;;  %315 = vmatpush3.bf16.msra.mxu0 %v33_v3  ;;  %316 = vmatprep.mubr.msk.bf16.mxu0 %vm342_vm1, %v341_v0 }
   0x9   :  { %v23_v7 = vpack.c.bf16 %v22_v6, %v22_v6 }
   0xb   :  { %v24_v8 = vunpack.c.l.bf16 %v23_v7  ;;  %305 = vmatmul.mubr.msk.bf16.vlgmr.msra.gmra.mrb[0].mxu1 %vm27_vm2, %v23_v7 }
   0xd   :  { %v25_v9 = vsub.f32 %v22_v6, %v24_v8 }
   0xf   :  { %v26_v10 = vpack.c.bf16 %v25_v9, %v25_v9 }
  0x12   :  { %317 = vmatmul.mubr.msk.bf16.vlgmr.msra.gmra.mrb[0].mxu0 %vm27_vm2, %v26_v10 }
  0xde   :  { %v69_v11 = vpop.f32.mrb[0].mxu1 }
  0xdf   :  { %v306_v12 = vpop.f32.mrb[1].mxu1 }
  0xe0   :  { %v72_v13 = vpop.f32.mrb[2].mxu1 }
  0xe1   :  { %v307_v14 = vpop.f32.mrb[3].mxu1 }
  0xe5   :  { %v155_v15 = vpop.f32.mrb[0].mxu0 }
  0xe6   :  { %v320_v17 = vadd.f32 %v155_v15, %v69_v11  ;;  %v318_v18 = vpop.f32.mrb[1].mxu0 }
  0xe7   :  { %v158_v20 = vpop.f32.mrb[2].mxu0 }
  0xe8   :  { %v169_v21 = vmul.f32 %v320_v17, %v290_v16  ;;  %v319_v22 = vpop.f32.mrb[3].mxu0 }
  0xea   :  { %v386_v23 = vadd.f32 %v291_v19, %v169_v21 }
  0xec   :  { %v181_v24 = vand.u32 2139095040, %v386_v23  ;;  %v178_v28 = vand.u32 2147483647, %v386_v23  ;;  %vm180_vm10 = vcmp.lt.s32.totalorder %v386_v23, 0  ;;  %vm270_vm15 = vweird.f32 %v386_v23 }
  0xee   :  { %v182_v25 = vshrl.u32 %v181_v24, 23  ;;  %v185_v31 = vand.u32 8388607, %v178_v28  ;;  %vm179_vm11 = vcmp.le.f32.partialorder %v178_v28, 0.7853982 }
  0xf0   :  { %v292_v26 = vadd.s32 4294967169, %v182_v25  ;;  %v186_v50 = vor.u32 8388608, %v185_v31 }
  0xf2   :  { %v188_v27 = vadd.s32 1, %v292_v26  ;;  %v226_v0 = vshll.u32 %v186_v50, 8 }
  0xf4   :  { %vm189_vm3 = vcmp.gt.s32.totalorder %v188_v27, 0 }
  0xf5   :  { %v190_v29 = vsel %vm189_vm3, %v188_v27, 0 }
  0xf6   :  { %v192_v30 = vand.u32 31, %v190_v29  ;;  %v191_v33 = vshrl.u32 %v190_v29, 5 }
  0xf8   :  { %v193_v32 = vsub.s32 32, %v192_v30  ;;  %v195_v35 = vshll.u32 %v343_v34, %v192_v30  ;;  %v198_v37 = vshll.u32 %v344_v36, %v192_v30  ;;  %v201_v41 = vshll.u32 %v345_v39, %v192_v30 }
  0xf9   :  { %v204_v44 = vshll.u32 %v346_v42, %v192_v30  ;;  %v207_v47 = vshll.u32 %v347_v45, %v192_v30  ;;  %vm210_vm4 = vcmp.lt.s32.totalorder %v191_v33, 1  ;;  %vm213_vm5 = vcmp.lt.s32.totalorder %v191_v33, 4 }
  0xfa   :  { %v196_v38 = vshrl.u32 %v344_v36, %v193_v32  ;;  %v199_v40 = vshrl.u32 %v345_v39, %v193_v32  ;;  %v202_v43 = vshrl.u32 %v346_v42, %v193_v32  ;;  %v205_v46 = vshrl.u32 %v347_v45, %v193_v32 }
  0xfb   :  { %v208_v49 = vshrl.u32 %v348_v48, %v193_v32  ;;  %v194_v59 = vshrl.u32 %v343_v34, %v193_v32  ;;  %vm212_vm6 = vcmp.lt.s32.totalorder %v191_v33, 3  ;;  %vm211_vm7 = vcmp.lt.s32.totalorder %v191_v33, 2 }
  0xfc   :  { %v197_v51 = vor.u32 %v196_v38, %v195_v35  ;;  %v200_v52 = vor.u32 %v199_v40, %v198_v37  ;;  %v203_v53 = vor.u32 %v202_v43, %v201_v41  ;;  %v206_v54 = vor.u32 %v205_v46, %v204_v44 }
  0xfd   :  { %v209_v55 = vor.u32 %v208_v49, %v207_v47 }
  0xfe   :  { %v215_v56 = vsel %vm213_vm5, %v203_v53, 2102212464  ;;  %v218_v57 = vsel %vm210_vm4, %v197_v51, %v200_v52  ;;  %v222_v58 = vsel %vm210_vm4, %v200_v52, %v203_v53  ;;  %v219_v60 = vsel %vm213_vm5, %v206_v54, 920167782 }
  0xff   :  { %v223_v61 = vsel %vm213_vm5, %v209_v55, 1326507024  ;;  %v220_v62 = vsel %vm212_vm6, %v203_v53, %v219_v60  ;;  %v214_v1 = vsel %vm210_vm4, %v194_v59, %v197_v51  ;;  %v216_v2 = vsel %vm212_vm6, %v200_v52, %v215_v56 }
 0x100   :  { %v224_v63 = vsel %vm212_vm6, %v206_v54, %v223_v61  ;;  %v221_v3 = vsel %vm211_vm7, %v218_v57, %v220_v62  ;;  %v217_v9 = vsel %vm211_vm7, %v214_v1, %v216_v2 }
 0x101   :  { %v225_v4 = vsel %vm211_vm7, %v222_v58, %v224_v63  ;;  %v395_v7 = vmul.u32.u64.low %v226_v0, %v221_v3  ;;  %v396_v8 = vmul.u32.u64.high %v226_v0, %v221_v3, %v395_v7  ;;  %v233_v11 = vmul.u32 %v226_v0, %v217_v9 }
 0x102   :  { %v392_v5 = vmul.u32.u64.low %v226_v0, %v225_v4  ;;  %v393_v6 = vmul.u32.u64.high %v226_v0, %v225_v4, %v392_v5 }
 0x103   :  { %v236_v10 = vadd.s32 1, %v396_v8 }
 0x104   :  { %vm235_vm8 = vc.u32 %v393_v6, %v395_v7  ;;  %v234_v24 = vadd.s32 %v395_v7, %v393_v6 }
 0x105   :  { %v237_v12 = vsel %vm235_vm8, %v236_v10, %v396_v8 }
 0x106   :  { %v238_v13 = vadd.s32 %v237_v12, %v233_v11 }
 0x108   :  { %v239_v14 = vadd.s32 536870912, %v238_v13 }
 0x10a   :  { %v240_v15 = vshrl.u32 %v239_v14, 30 }
 0x10c   :  { %v241_v16 = vshll.u32 %v240_v15, 30  ;;  %v264_v37 = vsub.s32 4, %v240_v15 }
 0x10e   :  { %v242_v17 = vsub.s32 %v238_v13, %v241_v16  ;;  %v265_v40 = vsel %vm180_vm10, %v264_v37, %v240_v15 }
 0x10f   :  { %v267_v42 = vsel %vm179_vm11, 0, %v265_v40 }
 0x110   :  { %v244_v18 = vsub.s32 0, %v242_v17  ;;  %v271_v43 = vadd.s32 3, %v267_v42 }
 0x112   :  { %v293_v19 = vmin.u32 %v244_v18, %v242_v17  ;;  %v272_v44 = vand.u32 3, %v271_v43 }
 0x114   :  { %v246_v20 = vclz %v293_v19  ;;  %vm277_vm12 = vcmp.eq.s32.totalorder %v272_v44, 2  ;;  %vm274_vm13 = vcmp.eq.s32.totalorder %v272_v44, 0  ;;  %vm273_vm14 = vcmp.lt.s32.totalorder %v272_v44, 2 }
 0x116   :  { %v294_v21 = vadd.s32 4294967294, %v246_v20 }
 0x118   :  { %vm295_vm9 = vcmp.lt.s32.totalorder %v294_v21, 0 }
 0x119   :  { %v249_v22 = vsel %vm295_vm9, 0, %v294_v21 }
 0x11a   :  { %v250_v25 = vsub.s32 32, %v249_v22  ;;  %v254_v26 = vsub.s32 4294967266, %v249_v22  ;;  %v251_v27 = vshll.u32 %v242_v17, %v249_v22 }
 0x11c   :  { %v252_v29 = vshrl.u32 %v234_v24, %v250_v25  ;;  %v255_v30 = vadd.s32 127, %v254_v26 }
 0x11e   :  { %v253_v31 = vor.u32 %v252_v29, %v251_v27  ;;  %v256_v32 = vshll.u32 %v255_v30, 23 }
 0x120   :  { %v257_v33 = vor.u32 4788187, %v256_v32  ;;  %v260_v35 = vcvt.s32.f32 %v253_v31 }
 0x122   :  { %v258_v34 = vand.u32 2147483647, %v257_v33 }
 0x124   :  { %v261_v36 = vmul.f32 %v260_v35, %v258_v34 }
 0x126   :  { %v262_v38 = vxor.u32 2147483648, %v261_v36 }
 0x128   :  { %v263_v39 = vsel %vm180_vm10, %v262_v38, %v261_v36 }
 0x129   :  { %v266_v41 = vsel %vm179_vm11, %v386_v23, %v263_v39 }
 0x12a   :  { %337 = vcosq.f32 %v266_v41 }
 0x12b   :  { %339 = vsinq.f32 %v266_v41 }
 0x134   :  { %v338_v45 = vpop.eup %337 }
 0x135   :  { %v340_v46 = vpop.eup %339  ;;  %v278_v47 = vxor.u32 2147483648, %v338_v45 }
 0x136   :  { %v275_v48 = vxor.u32 2147483648, %v340_v46 }
 0x137   :  { %v279_v49 = vsel %vm277_vm12, %v278_v47, %v340_v46 }
 0x138   :  { %v276_v50 = vsel %vm274_vm13, %v338_v45, %v275_v48 }
 0x139   :  { %v280_v28 = vsel %vm273_vm14, %v276_v50, %v279_v49 }
 0x13a   :  { %v281_v51 = vsel %vm270_vm15, nan, %v280_v28 }
 0x13b   :  { %282 = vst [vmem:[%s414_s4] sm:$0xf] %v281_v51 }

</bundles_post_ra>
